<compile_context>
chip_gen: v7x
topology: tpu7x:2x2x1
jax: 0.10.0
libtpu: 0.0.40
codegen_flags: <defaults>
</compile_context>

<pallas_src>
import functools

import jax
import jax.numpy as jnp
from jax.experimental import pallas as pl
from jax.experimental.pallas import tpu as pltpu


COMPUTE_DTYPE = jnp.bfloat16          # MXU operand dtype (accumulate in f32)
_LN_EPS = 1e-5


# ----------------------------- hardware config ------------------------------ #

def _vmem_limit_bytes():
    """~75% of physical VMEM: ~96 MiB on v5e/v6e (128 MiB), ~48 MiB on v7x (64 MiB)."""
    try:
        info = pltpu.get_tpu_info()
        for name in ("vmem_capacity_bytes", "vmem_size_bytes", "vmem_bytes"):
            cap = getattr(info, name, None)
            if cap:
                return min(int(cap) * 3 // 4, 96 * 1024 * 1024)
    except Exception:
        pass
    return 48 * 1024 * 1024           # safe on every generation (v7x: 64 MiB)


_VMEM_LIMIT = _vmem_limit_bytes()


def _default_exp_dtype():
    """bf16 EUP exists on v6e/v7x (≈2x transcendental throughput); v5e needs f32."""
    try:
        kind = jax.devices()[0].device_kind.lower()
    except Exception:
        return jnp.float32
    if ("v6" in kind) or ("v7" in kind) or ("7x" in kind):
        return jnp.bfloat16
    return jnp.float32


# ------------------- single-buffered constant-block specs ------------------- #

_SINGLE_BUFFER_OK = None


def _probe_kernel(x_ref, o_ref):
    o_ref[...] = x_ref[...] + 1.0


def _single_buffer_ok():
    """pl.Buffered(1) on grid-invariant weight blocks halves their VMEM footprint;
    probe once so an unsupported pipeline_mode degrades to default buffering
    instead of failing the layer."""
    global _SINGLE_BUFFER_OK
    if _SINGLE_BUFFER_OK is None:
        try:
            spec = pl.BlockSpec((8, 128), lambda i: (0, 0),
                                pipeline_mode=pl.Buffered(1))
            out = pl.pallas_call(
                _probe_kernel,
                out_shape=jax.ShapeDtypeStruct((8, 128), jnp.float32),
                grid=(1,),
                in_specs=[spec],
                out_specs=pl.BlockSpec((8, 128), lambda i: (0, 0)),
            )(jnp.zeros((8, 128), jnp.float32))
            jax.block_until_ready(out)
            _SINGLE_BUFFER_OK = True
        except Exception:
            _SINGLE_BUFFER_OK = False
    return _SINGLE_BUFFER_OK


def _const_spec(shape):
    """BlockSpec for grid-invariant operands (weights / LN params / biases)."""
    index_map = lambda *_: (0,) * len(shape)
    if _single_buffer_ok():
        return pl.BlockSpec(shape, index_map, pipeline_mode=pl.Buffered(1))
    return pl.BlockSpec(shape, index_map)


# --------------------------------- helpers ---------------------------------- #

def _layer_norm(x, gamma, beta, eps=_LN_EPS):
    """Single-pass LayerNorm (var = E[x^2] - mu^2), computed in f32."""
    mu = jnp.mean(x, axis=-1, keepdims=True)
    ms = jnp.mean(x * x, axis=-1, keepdims=True)
    var = ms - mu * mu
    return (x - mu) * jax.lax.rsqrt(var + eps) * gamma + beta


def _pick_tile(n, target, align=8):
    """Largest tile <= target that divides n and is a multiple of `align` (else n)."""
    if n <= target:
        return n
    t = (min(target, n) // align) * align
    while t >= align:
        if n % t == 0:
            return t
        t -= align
    return n


# --------------------------- K/V projection kernel --------------------------- #
# Writes bf16 K/V to HBM so the flash kernel can stream (tk, D) tiles instead
# of holding (Lk, D) caches in VMEM (perf feedback #1/#3).

def _project_kv_kernel(x_ref, g_ref, b_ref, wk_ref, wv_ref, k_ref, v_ref,
                       *, pre_norm):
    x = x_ref[0].astype(jnp.float32)
    if pre_norm:
        x = _layer_norm(x, g_ref[...], b_ref[...])
    xc = x.astype(COMPUTE_DTYPE)
    k_ref[0] = jnp.dot(xc, wk_ref[...],
                       preferred_element_type=jnp.float32).astype(k_ref.dtype)
    v_ref[0] = jnp.dot(xc, wv_ref[...],
                       preferred_element_type=jnp.float32).astype(v_ref.dtype)


def project_kv(xkv, norm_kv, wk, wv, *, pre_norm, tl=256):
    B, Lk, D = xkv.shape
    tl = _pick_tile(Lk, tl)
    nl = Lk // tl
    kernel = functools.partial(_project_kv_kernel, pre_norm=pre_norm)
    shp = jax.ShapeDtypeStruct((B, Lk, D), COMPUTE_DTYPE)
    return pl.pallas_call(
        kernel,
        out_shape=(shp, shp),
        grid=(B, nl),
        in_specs=[
            pl.BlockSpec((1, tl, D), lambda b, i: (b, i, 0)),
            _const_spec((1, D)), _const_spec((1, D)),
            _const_spec((D, D)), _const_spec((D, D)),
        ],
        out_specs=(pl.BlockSpec((1, tl, D), lambda b, i: (b, i, 0)),
                   pl.BlockSpec((1, tl, D), lambda b, i: (b, i, 0))),
        compiler_params=pltpu.CompilerParams(
            dimension_semantics=("parallel", "parallel"),
            vmem_limit_bytes=_VMEM_LIMIT),
    )(xkv, norm_kv["g"], norm_kv["b"], wk, wv)


# --------------------------- flash attention kernel -------------------------- #
# One residual attention stage of forward_serial:
#   pre_norm:  out = x + MHA(LN_q(x), K, V)              (K/V pre-projected)
#   post_norm: out = LN_q(x + MHA(x, K, V))

def _flash_attn_kernel(x_ref, k_ref, v_ref, g_ref, b_ref, wq_ref, wo_ref,
                       out_ref, q_scr, m_scr, l_scr, acc_scr,
                       *, num_heads, pre_norm, scale, exp_dtype):
    ki = pl.program_id(2)
    nk = pl.num_programs(2)
    tq, d = q_scr.shape
    hd = d // num_heads

    # -- per-(b, qi) init: online-softmax state + scaled Q projection ---------
    @pl.when(ki == 0)
    def _init():
        m_scr[...] = jnp.full(m_scr.shape, -jnp.inf, m_scr.dtype)
        l_scr[...] = jnp.zeros(l_scr.shape, l_scr.dtype)
        acc_scr[...] = jnp.zeros(acc_scr.shape, acc_scr.dtype)
        xq = x_ref[0].astype(jnp.float32)
        if pre_norm:
            xq = _layer_norm(xq, g_ref[...], b_ref[...])
        q = jnp.dot(xq.astype(COMPUTE_DTYPE), wq_ref[...],
                    preferred_element_type=jnp.float32)          # (tq, d) f32
        q_scr[...] = (q * scale).astype(q_scr.dtype)             # scale in f32

    # -- online softmax over this streamed K/V tile (all heads) ---------------
    q_all = q_scr[...]            # (tq, d) bf16, pre-scaled
    k_tile = k_ref[0]             # (tk, d) bf16
    v_tile = v_ref[0]             # (tk, d) bf16
    m_full = m_scr[...]           # (tq, d) f32, lane-replicated per head
    l_full = l_scr[...]
    acc_full = acc_scr[...]

    # Static unroll over heads; only value-level lane slices inside the loop.
    # All scratch writes happen once per KV step as full-width (tq, d) stores.
    # NOTE: with large tq*tk the unrolled loop can raise vreg pressure; convert
    # to lax.fori_loop / reduce tk if the bundle dump shows spills.
    alpha_parts, m_parts, l_parts, pv_parts = [], [], [], []
    for h in range(num_heads):
        sl = slice(h * hd, (h + 1) * hd)
        s = jax.lax.dot_general(
            q_all[:, sl], k_tile[:, sl],
            dimension_numbers=(((1,), (1,)), ((), ())),
            preferred_element_type=jnp.float32)                  # (tq, tk) f32
        m_prev = m_full[:, h * hd:h * hd + 1]                    # (tq, 1)
        l_prev = l_full[:, h * hd:h * hd + 1]
        m_new = jnp.maximum(m_prev, jnp.max(s, axis=-1, keepdims=True))
        alpha = jnp.exp(m_prev - m_new)                          # (tq, 1) f32
        p = jnp.exp((s - m_new).astype(exp_dtype))               # (tq, tk)
        l_new = alpha * l_prev + jnp.sum(p.astype(jnp.float32), axis=-1,
                                         keepdims=True)
        pv = jax.lax.dot_general(
            p.astype(COMPUTE_DTYPE), v_tile[:, sl],
            dimension_numbers=(((1,), (0,)), ((), ())),
            preferred_element_type=jnp.float32)                  # (tq, hd) f32
        alpha_parts.append(jnp.broadcast_to(alpha, (tq, hd)))
        m_parts.append(jnp.broadcast_to(m_new, (tq, hd)))
        l_parts.append(jnp.broadcast_to(l_new, (tq, hd)))
        pv_parts.append(pv)

    alpha_full = jnp.concatenate(alpha_parts, axis=-1)           # (tq, d)
    acc_scr[...] = alpha_full * acc_full + jnp.concatenate(pv_parts, axis=-1)
    m_scr[...] = jnp.concatenate(m_parts, axis=-1)
    l_scr[...] = jnp.concatenate(l_parts, axis=-1)

    # -- finalize: normalize (one full-width multiply), Wo, residual, post-LN --
    @pl.when(ki == nk - 1)
    def _finalize():
        inv_l = pl.reciprocal(l_scr[...], approx=True)           # (tq, d) EUP
        attn = (acc_scr[...] * inv_l).astype(COMPUTE_DTYPE)
        o = jnp.dot(attn, wo_ref[...], preferred_element_type=jnp.float32)
        y = x_ref[0].astype(jnp.float32) + o                     # residual
        if not pre_norm:
            y = _layer_norm(y, g_ref[...], b_ref[...])
        out_ref[0] = y.astype(out_ref.dtype)


def flash_attn(x, k, v, norm_q, wq, wo, *, num_heads, pre_norm, tq, tk,
               exp_dtype):
    B, Lq, D = x.shape
    Bk, Lk, Dk = k.shape
    assert Bk == B and Dk == D and D % num_heads == 0
    tq = _pick_tile(Lq, tq)
    tk = _pick_tile(Lk, tk)
    nq, nk = Lq // tq, Lk // tk
    hd = D // num_heads
    scale = 1.0 / float(hd) ** 0.5

    kernel = functools.partial(_flash_attn_kernel, num_heads=num_heads,
                               pre_norm=pre_norm, scale=scale,
                               exp_dtype=exp_dtype)
    return pl.pallas_call(
        kernel,
        out_shape=jax.ShapeDtypeStruct((B, Lq, D), x.dtype),
        grid=(B, nq, nk),
        in_specs=[
            # x (Q source + residual): ki-invariant index -> fetched once per (b, qi)
            pl.BlockSpec((1, tq, D), lambda b, qi, ki: (b, qi, 0)),
            pl.BlockSpec((1, tk, D), lambda b, qi, ki: (b, ki, 0)),   # K tiles
            pl.BlockSpec((1, tk, D), lambda b, qi, ki: (b, ki, 0)),   # V tiles
            _const_spec((1, D)), _const_spec((1, D)),                 # LN gamma/beta
            _const_spec((D, D)), _const_spec((D, D)),                 # Wq, Wo
        ],
        out_specs=pl.BlockSpec((1, tq, D), lambda b, qi, ki: (b, qi, 0)),
        scratch_shapes=[
            pltpu.VMEM((tq, D), COMPUTE_DTYPE),   # scaled Q (computed at ki==0)
            pltpu.VMEM((tq, D), jnp.float32),     # running max (lane-replicated)
            pltpu.VMEM((tq, D), jnp.float32),     # running sum (lane-replicated)
            pltpu.VMEM((tq, D), jnp.float32),     # output accumulator
        ],
        compiler_params=pltpu.CompilerParams(
            dimension_semantics=("parallel", "parallel", "arbitrary"),
            vmem_limit_bytes=_VMEM_LIMIT),
    )(x, k, v, norm_q["g"], norm_q["b"], wq, wo)


def attn_stage(x, kv, attn_p, norm_q, norm_kv, *, num_heads, pre_norm, tq, tk,
               exp_dtype):
    k, v = project_kv(kv, norm_kv, attn_p["wk"], attn_p["wv"],
                      pre_norm=pre_norm, tl=tk)
    return flash_attn(x, k, v, norm_q, attn_p["wq"], attn_p["wo"],
                      num_heads=num_heads, pre_norm=pre_norm,
                      tq=tq, tk=tk, exp_dtype=exp_dtype)


# ------------------------------ fused MLP stage ------------------------------ #
#   pre_norm:  out = x + MLP(LN(x))        post_norm: out = LN(x + MLP(x))
# The hidden dimension is tiled with an extra "arbitrary" grid axis: w1 column
# tiles, w2 row tiles, f32 (tl, D) accumulator (perf feedback).

def _mlp_stage_kernel(x_ref, g_ref, b_ref, w1_ref, b1_ref, w2_ref, b2_ref,
                      out_ref, xn_scr, acc_scr, *, pre_norm, activation):
    fi = pl.program_id(2)
    nf = pl.num_programs(2)

    @pl.when(fi == 0)
    def _init():
        acc_scr[...] = jnp.zeros(acc_scr.shape, acc_scr.dtype)
        x = x_ref[0].astype(jnp.float32)
        xn = _layer_norm(x, g_ref[...], b_ref[...]) if pre_norm else x
        xn_scr[...] = xn.astype(xn_scr.dtype)

    h = jnp.dot(xn_scr[...], w1_ref[...],
                preferred_element_type=jnp.float32) + b1_ref[...]   # (tl, tf)
    if activation == "relu":
        h = jnp.maximum(h, 0.0)
    else:
        # TODO(synk): torch nn.GELU is exact erf; tanh approximation used here.
        h = jax.nn.gelu(h, approximate=True)
    acc_scr[...] += jnp.dot(h.astype(COMPUTE_DTYPE), w2_ref[...],
                            preferred_element_type=jnp.float32)     # (tl, D)

    @pl.when(fi == nf - 1)
    def _finalize():
        y = x_ref[0].astype(jnp.float32) + acc_scr[...] + b2_ref[...]
        if not pre_norm:
            y = _layer_norm(y, g_ref[...], b_ref[...])
        out_ref[0] = y.astype(out_ref.dtype)


def mlp_stage(x, mlp_p, norm_p, *, pre_norm, activation, tl=256, tf=512):
    B, L, D = x.shape
    dff = mlp_p["w1"].shape[1]
    tl = _pick_tile(L, tl)
    tf = _pick_tile(dff, tf, align=128)     # lane dim of the w1/b1 tiles
    nl, nf = L // tl, dff // tf
    kernel = functools.partial(_mlp_stage_kernel, pre_norm=pre_norm,
                               activation=activation)
    return pl.pallas_call(
        kernel,
        out_shape=jax.ShapeDtypeStruct((B, L, D), x.dtype),
        grid=(B, nl, nf),
        in_specs=[
            # x: fi-invariant index -> resident across the hidden-dim axis
            pl.BlockSpec((1, tl, D), lambda b, i, fi: (b, i, 0)),
            _const_spec((1, D)), _const_spec((1, D)),                # LN gamma/beta
            pl.BlockSpec((D, tf), lambda b, i, fi: (0, fi)),         # w1 col tile
            pl.BlockSpec((1, tf), lambda b, i, fi: (0, fi)),         # b1 tile
            pl.BlockSpec((tf, D), lambda b, i, fi: (fi, 0)),         # w2 row tile
            _const_spec((1, D)),                                     # b2
        ],
        out_specs=pl.BlockSpec((1, tl, D), lambda b, i, fi: (b, i, 0)),
        scratch_shapes=[
            pltpu.VMEM((tl, D), COMPUTE_DTYPE),   # (pre-)normed input, cached
            pltpu.VMEM((tl, D), jnp.float32),     # output accumulator
        ],
        compiler_params=pltpu.CompilerParams(
            dimension_semantics=("parallel", "parallel", "arbitrary"),
            vmem_limit_bytes=_VMEM_LIMIT),
    )(x, norm_p["g"], norm_p["b"],
      mlp_p["w1"], mlp_p["b1"], mlp_p["w2"], mlp_p["b2"])


# ---------------------------- MSPSTTDecoderLayer ----------------------------- #

def mspstt_decoder_layer(x, cross, params, *, num_heads, pre_norm=False,
                         activation="relu", tq=256, tk=256, tf=512,
                         exp_dtype=None):
    """forward_serial of MSPSTTDecoderLayer (parallelize=False, dropout=0.0).

    Activations are carried between the five stages in bf16; LN / softmax stats
    and accumulators stay in f32 inside the kernels.
    """
    if exp_dtype is None:
        exp_dtype = _default_exp_dtype()
    x = x.astype(COMPUTE_DTYPE)
    cross = cross.astype(COMPUTE_DTYPE)
    kw = dict(num_heads=num_heads, pre_norm=pre_norm, tq=tq, tk=tk,
              exp_dtype=exp_dtype)
    # 1) temporal self-attention
    x = attn_stage(x, x, params["sa_t"], params["norm_sa_t"],
                   params["norm_sa_t"], **kw)
    # 2) spatial self-attention (module takes only x -> self-attention)
    x = attn_stage(x, x, params["sa_s"], params["norm_sa_s"],
                   params["norm_sa_s"], **kw)
    # 3) temporal cross-attention against encoder memory (`cross`)
    x = attn_stage(x, cross, params["ca_t"], params["norm_ca_t"],
                   params["norm_cross"], **kw)
    # 4) spatial attention after cross (module takes only x -> self-attention)
    x = attn_stage(x, x, params["ca_s"], params["norm_ca_s"],
                   params["norm_ca_s"], **kw)
    # 5) MLP
    x = mlp_stage(x, params["mlp"], params["norm_mlp"], pre_norm=pre_norm,
                  activation=activation, tl=tq, tf=tf)
    return x


# ---------------------------------- params ----------------------------------- #

def init_params(key, d_model, d_ff):
    s = 0.02

    def attn_p(k):
        ks = jax.random.split(k, 4)

        def w(kk):
            return (jax.random.normal(kk, (d_model, d_model), jnp.float32) * s
                    ).astype(COMPUTE_DTYPE)

        return dict(wq=w(ks[0]), wk=w(ks[1]), wv=w(ks[2]), wo=w(ks[3]))

    def ln_p():
        return dict(g=jnp.ones((1, d_model), jnp.float32),
                    b=jnp.zeros((1, d_model), jnp.float32))

    ks = jax.random.split(key, 6)
    return dict(
        sa_t=attn_p(ks[0]), sa_s=attn_p(ks[1]),
        ca_t=attn_p(ks[2]), ca_s=attn_p(ks[3]),
        mlp=dict(
            w1=(jax.random.normal(ks[4], (d_model, d_ff), jnp.float32) * s
                ).astype(COMPUTE_DTYPE),
            b1=jnp.zeros((1, d_ff), jnp.float32),
            w2=(jax.random.normal(ks[5], (d_ff, d_model), jnp.float32) * s
                ).astype(COMPUTE_DTYPE),
            b2=jnp.zeros((1, d_model), jnp.float32)),
        norm_sa_t=ln_p(), norm_sa_s=ln_p(), norm_ca_t=ln_p(),
        norm_ca_s=ln_p(), norm_cross=ln_p(), norm_mlp=ln_p(),
    )


# ------------------------- pure-JAX numerics reference ----------------------- #

def _ref_decoder_layer(x, cross, params, *, num_heads, pre_norm, activation):
    """Reference mirroring the kernels' bf16-operand / f32-accumulate numerics."""
    f32 = jnp.float32

    def ln(v, p):
        mu = jnp.mean(v, axis=-1, keepdims=True)
        var = jnp.mean((v - mu) ** 2, axis=-1, keepdims=True)
        return (v - mu) * jax.lax.rsqrt(var + _LN_EPS) * p["g"][0] + p["b"][0]

    def mm(a, w):
        return jnp.dot(a.astype(COMPUTE_DTYPE), w, preferred_element_type=f32)

    def attn(xq, xkv, p, norm_q, norm_kv):
        B, Lq, D = xq.shape
        hd = D // num_heads
        scale = 1.0 / float(hd) ** 0.5
        res = xq.astype(f32)
        q_in = ln(res, norm_q) if pre_norm else res
        kv_in = xkv.astype(f32)
        if pre_norm:
            kv_in = ln(kv_in, norm_kv)
        q = mm(q_in, p["wq"]) * scale
        k = mm(kv_in, p["wk"])
        v = mm(kv_in, p["wv"])
        q = q.reshape(B, Lq, num_heads, hd)
        k = k.reshape(B, -1, num_heads, hd)
        v = v.reshape(B, -1, num_heads, hd)
        s = jnp.einsum("bqhd,bkhd->bhqk", q.astype(COMPUTE_DTYPE),
                       k.astype(COMPUTE_DTYPE), preferred_element_type=f32)
        pr = jax.nn.softmax(s, axis=-1)
        o = jnp.einsum("bhqk,bkhd->bqhd", pr.astype(COMPUTE_DTYPE),
                       v.astype(COMPUTE_DTYPE), preferred_element_type=f32)
        o = mm(o.reshape(B, Lq, D), p["wo"])
        y = res + o
        if not pre_norm:
            y = ln(y, norm_q)
        return y.astype(COMPUTE_DTYPE)

    def mlp(xin, p, norm_p):
        res = xin.astype(f32)
        h_in = ln(res, norm_p) if pre_norm else res
        h = mm(h_in, p["w1"]) + p["b1"][0]
        h = jnp.maximum(h, 0.0) if activation == "relu" else jax.nn.gelu(
            h, approximate=True)
        y = mm(h, p["w2"]) + p["b2"][0]
        y = res + y
        if not pre_norm:
            y = ln(y, norm_p)
        return y.astype(COMPUTE_DTYPE)

    xb = x.astype(COMPUTE_DTYPE)
    cb = cross.astype(COMPUTE_DTYPE)
    xb = attn(xb, xb, params["sa_t"], params["norm_sa_t"], params["norm_sa_t"])
    xb = attn(xb, xb, params["sa_s"], params["norm_sa_s"], params["norm_sa_s"])
    xb = attn(xb, cb, params["ca_t"], params["norm_ca_t"], params["norm_cross"])
    xb = attn(xb, xb, params["ca_s"], params["norm_ca_s"], params["norm_ca_s"])
    xb = mlp(xb, params["mlp"], params["norm_mlp"])
    return xb


# ------------------------------------ main ------------------------------------ #

if __name__ == "__main__":
    B = 2
    T, Hs, Ws = 2, 4, 4              # decoder tokens:  L  = 32
    Tc, Hc, Wc = 4, 4, 4             # encoder memory:  Lc = 64
    # Demo config is small; real configs should use D / d_ff as multiples of
    # 256 and head_dim >= 128 for full MXU fill on v6e/v7x.
    d_model, num_heads, d_ff = 128, 4, 256

    key = jax.random.PRNGKey(0)
    kx, kc, kp = jax.random.split(key, 3)
    L, Lc = T * Hs * Ws, Tc * Hc * Wc
    x = jax.random.normal(kx, (B, L, d_model), jnp.float32)
    cross = jax.random.normal(kc, (B, Lc, d_model), jnp.float32)
    params = init_params(kp, d_model, d_ff)

    # Tiny tiles so every stage spans >1 KV tile / >1 hidden tile and the
    # online-softmax + accumulator paths are exercised; use 256-512 tiles on
    # realistic shapes.
    out = mspstt_decoder_layer(x, cross, params, num_heads=num_heads,
                               pre_norm=False, activation="relu",
                               tq=16, tk=16, tf=128)
    out = jax.block_until_ready(out)
    assert out.shape == (B, L, d_model)
    out32 = out.astype(jnp.float32)
    assert bool(jnp.all(jnp.isfinite(out32)))

    # Numerics check vs. a pure-JAX reference with a matching bf16/f32 mix
    # (addresses the review's approx-reciprocal / single-pass-LN concerns).
    ref = _ref_decoder_layer(x, cross, params, num_heads=num_heads,
                             pre_norm=False, activation="relu"
                             ).astype(jnp.float32)
    assert bool(jnp.allclose(out32, ref, rtol=5e-2, atol=5e-2)), (
        "max abs err = %f" % float(jnp.max(jnp.abs(out32 - ref))))
    print("KERNEL_OK")
</pallas_src>

<mosaic_0001>
module attributes {stable_mosaic.version = 11 : i64} {
  func.func @_probe_kernel(%arg0: i32, %arg1: memref<8x128xf32, #tpu.memory_space<vmem>>, %arg2: memref<8x128xf32, #tpu.memory_space<vmem>>) attributes {dimension_semantics = [#tpu.dimension_semantics<arbitrary>], iteration_bounds = array<i64: 1>, scalar_prefetch = 0 : i64, scratch_operands = 0 : i64, tpu.core_type = #tpu.core_type<tc>, window_params = [{pipeline_mode = #tpu.pipeline_mode<synchronous>, transform_indices = @transform_0, window_bounds = array<i64: 8, 128>}, {pipeline_mode = #tpu.pipeline_mode<synchronous>, transform_indices = @transform_1, window_bounds = array<i64: 8, 128>}]} {
    %c0 = arith.constant 0 : index
    %c0_0 = arith.constant 0 : index
    %0 = vector.load %arg1[%c0, %c0_0] : memref<8x128xf32, #tpu.memory_space<vmem>>, vector<8x128xf32>
    %cst = arith.constant 1.000000e+00 : f32
    %1 = vector.broadcast %cst : f32 to vector<8x128xf32>
    %2 = arith.addf %0, %1 : vector<8x128xf32>
    %c0_1 = arith.constant 0 : index
    %c0_2 = arith.constant 0 : index
    %3 = vector.load %arg2[%c0_1, %c0_2] : memref<8x128xf32, #tpu.memory_space<vmem>>, vector<8x128xf32>
    tpu.vector_store %arg2[%c0_1, %c0_2], %2 {strides = array<i32>} : memref<8x128xf32, #tpu.memory_space<vmem>>, vector<8x128xf32>,
    return
  }
  func.func @transform_0(%arg0: i32) -> (i32, i32) {
    %c0_i32 = arith.constant 0 : i32
    %c0_i32_0 = arith.constant 0 : i32
    %c0_i32_1 = arith.constant 0 : i32
    return %c0_i32, %c0_i32_0 : i32, i32
  }
  func.func @transform_1(%arg0: i32) -> (i32, i32) {
    %c0_i32 = arith.constant 0 : i32
    %c0_i32_0 = arith.constant 0 : i32
    %c0_i32_1 = arith.constant 0 : i32
    return %c0_i32, %c0_i32_0 : i32, i32
  }
}

module attributes {stable_mosaic.version = 11 : i64} {
  func.func @_project_kv_kernel(%arg0: i32, %arg1: i32, %arg2: memref<1x16x128xbf16, #tpu.memory_space<vmem>>, %arg3: memref<1x128xf32, #tpu.memory_space<vmem>>, %arg4: memref<1x128xf32, #tpu.memory_space<vmem>>, %arg5: memref<128x128xbf16, #tpu.memory_space<vmem>>, %arg6: memref<128x128xbf16, #tpu.memory_space<vmem>>, %arg7: memref<1x16x128xbf16, #tpu.memory_space<vmem>>, %arg8: memref<1x16x128xbf16, #tpu.memory_space<vmem>>) attributes {dimension_semantics = [#tpu.dimension_semantics<parallel>, #tpu.dimension_semantics<parallel>], iteration_bounds = array<i64: 2, 2>, scalar_prefetch = 0 : i64, scratch_operands = 0 : i64, tpu.core_type = #tpu.core_type<tc>, window_params = [{transform_indices = @transform_0, window_bounds = array<i64: 1, 16, 128>}, {pipeline_mode = #tpu.pipeline_mode<synchronous>, transform_indices = @transform_1, window_bounds = array<i64: 1, 128>}, {pipeline_mode = #tpu.pipeline_mode<synchronous>, transform_indices = @transform_2, window_bounds = array<i64: 1, 128>}, {pipeline_mode = #tpu.pipeline_mode<synchronous>, transform_indices = @transform_3, window_bounds = array<i64: 128, 128>}, {pipeline_mode = #tpu.pipeline_mode<synchronous>, transform_indices = @transform_4, window_bounds = array<i64: 128, 128>}, {transform_indices = @transform_5, window_bounds = array<i64: 1, 16, 128>}, {transform_indices = @transform_6, window_bounds = array<i64: 1, 16, 128>}]} {
    %c0 = arith.constant 0 : index
    %c0_0 = arith.constant 0 : index
    %c0_1 = arith.constant 0 : index
    %0 = vector.load %arg2[%c0, %c0_0, %c0_1] : memref<1x16x128xbf16, #tpu.memory_space<vmem>>, vector<1x16x128xbf16>
    %1 = vector.shape_cast %0 : vector<1x16x128xbf16> to vector<16x128xbf16>
    %2 = arith.extf %1 : vector<16x128xbf16> to vector<16x128xf32>
    %3 = arith.truncf %2 : vector<16x128xf32> to vector<16x128xbf16>
    %c0_2 = arith.constant 0 : index
    %c0_3 = arith.constant 0 : index
    %4 = vector.load %arg5[%c0_2, %c0_3] : memref<128x128xbf16, #tpu.memory_space<vmem>>, vector<128x128xbf16>
    %cst = arith.constant dense<0.000000e+00> : vector<16x128xf32>
    %5 = tpu.matmul %3, %4, %cst {dimension_numbers = #tpu.dot_dimension_numbers<[1], [0], [0], [1], [0, 0, 1, 1], [], []>} : vector<16x128xbf16>, vector<128x128xbf16>, vector<16x128xf32> -> vector<16x128xf32>
    %6 = arith.truncf %5 : vector<16x128xf32> to vector<16x128xbf16>
    %c0_4 = arith.constant 0 : index
    %c0_5 = arith.constant 0 : index
    %c0_6 = arith.constant 0 : index
    %7 = vector.load %arg7[%c0_4, %c0_5, %c0_6] : memref<1x16x128xbf16, #tpu.memory_space<vmem>>, vector<1x16x128xbf16>
    %8 = vector.shape_cast %7 : vector<1x16x128xbf16> to vector<16x128xbf16>
    %9 = vector.shape_cast %6 : vector<16x128xbf16> to vector<1x16x128xbf16>
    tpu.vector_store %arg7[%c0_4, %c0_5, %c0_6], %9 {strides = array<i32>} : memref<1x16x128xbf16, #tpu.memory_space<vmem>>, vector<1x16x128xbf16>,
    %c0_7 = arith.constant 0 : index
    %c0_8 = arith.constant 0 : index
    %10 = vector.load %arg6[%c0_7, %c0_8] : memref<128x128xbf16, #tpu.memory_space<vmem>>, vector<128x128xbf16>
    %cst_9 = arith.constant dense<0.000000e+00> : vector<16x128xf32>
    %11 = tpu.matmul %3, %10, %cst_9 {dimension_numbers = #tpu.dot_dimension_numbers<[1], [0], [0], [1], [0, 0, 1, 1], [], []>} : vector<16x128xbf16>, vector<128x128xbf16>, vector<16x128xf32> -> vector<16x128xf32>
    %12 = arith.truncf %11 : vector<16x128xf32> to vector<16x128xbf16>
    %c0_10 = arith.constant 0 : index
    %c0_11 = arith.constant 0 : index
    %c0_12 = arith.constant 0 : index
    %13 = vector.load %arg8[%c0_10, %c0_11, %c0_12] : memref<1x16x128xbf16, #tpu.memory_space<vmem>>, vector<1x16x128xbf16>
    %14 = vector.shape_cast %13 : vector<1x16x128xbf16> to vector<16x128xbf16>
    %15 = vector.shape_cast %12 : vector<16x128xbf16> to vector<1x16x128xbf16>
    tpu.vector_store %arg8[%c0_10, %c0_11, %c0_12], %15 {strides = array<i32>} : memref<1x16x128xbf16, #tpu.memory_space<vmem>>, vector<1x16x128xbf16>,
    return
  }
  func.func @transform_0(%arg0: i32, %arg1: i32) -> (i32, i32, i32) {
    %c0_i32 = arith.constant 0 : i32
    %c0_i32_0 = arith.constant 0 : i32
    return %arg0, %arg1, %c0_i32 : i32, i32, i32
  }
  func.func @transform_1(%arg0: i32, %arg1: i32) -> (i32, i32) {
    %c0_i32 = arith.constant 0 : i32
    %c0_i32_0 = arith.constant 0 : i32
    %c0_i32_1 = arith.constant 0 : i32
    return %c0_i32, %c0_i32_0 : i32, i32
  }
  func.func @transform_2(%arg0: i32, %arg1: i32) -> (i32, i32) {
    %c0_i32 = arith.constant 0 : i32
    %c0_i32_0 = arith.constant 0 : i32
    %c0_i32_1 = arith.constant 0 : i32
    return %c0_i32, %c0_i32_0 : i32, i32
  }
  func.func @transform_3(%arg0: i32, %arg1: i32) -> (i32, i32) {
    %c0_i32 = arith.constant 0 : i32
    %c0_i32_0 = arith.constant 0 : i32
    %c0_i32_1 = arith.constant 0 : i32
    return %c0_i32, %c0_i32_0 : i32, i32
  }
  func.func @transform_4(%arg0: i32, %arg1: i32) -> (i32, i32) {
    %c0_i32 = arith.constant 0 : i32
    %c0_i32_0 = arith.constant 0 : i32
    %c0_i32_1 = arith.constant 0 : i32
    return %c0_i32, %c0_i32_0 : i32, i32
  }
  func.func @transform_5(%arg0: i32, %arg1: i32) -> (i32, i32, i32) {
    %c0_i32 = arith.constant 0 : i32
    %c0_i32_0 = arith.constant 0 : i32
    return %arg0, %arg1, %c0_i32 : i32, i32, i32
  }
  func.func @transform_6(%arg0: i32, %arg1: i32) -> (i32, i32, i32) {
    %c0_i32 = arith.constant 0 : i32
    %c0_i32_0 = arith.constant 0 : i32
    return %arg0, %arg1, %c0_i32 : i32, i32, i32
  }
}

</mosaic_0001>

<bundles_post_ra>
// kernel: tpu_custom_call.1
= control target key start
LH: loop header
LB: loop body
LE: loop exit
PB: predicated region body
PF: predicated region fallthrough
CT: control target
= control target key end

     0   :  { %6 = vsyncpa [#allocation3], 0  ;;  %s125_s0 = inlined_call_operand.hbm [shape: f32[8,128], index: 0, kind: input, shape index: {}]   ;;  %s126_s1 = inlined_call_operand.hbm [shape: f32[8,128], index: 1, kind: output, shape index: {}]  }
   0x1   :  { %7 = vsyncpa [#allocation4], 0  ;;  %s89_s6 = smov [#allocation2]   ;;  %s41_s10 = scalar_lea.hbm %s125_s0, 128 }
   0x2   :  { %s14_s7 = sshll.u32 %s89_s6, 4  ;;  %p42_p0 = scmp.ne.s32.totalorder %s125_s0, %s41_s10  ;;  %s15_s7 = int_to_ptr.vmem [resolvable:$true] %s14_s7 }
   0x3   :  { %p45_p1 = scmp.lt.u32.totalorder %s41_s10, %s125_s0 }
   0x5   :  { %p47_p2 = pnand %p45_p1, %p42_p0 }
   0x7   :  { %50 = shalt.err (!%p47_p2)
}
   0x8   :  { %s51_s15 = scalar_lea.vmem %s15_s7, 128  ;;  %p56_p4 = scmp.lt.s32.totalorder %s15_s7, %s15_s7 }
   0x9   :  { %p52_p3 = scmp.ne.s32.totalorder %s15_s7, %s51_s15  ;;  %p57_p5 = scmp.lt.s32.totalorder %s51_s15, %s51_s15 }
   0xb   :  { %p58_p6 = por %p57_p5, %p56_p4 }
   0xd   :  { %p59_p7 = pnand %p58_p6, %p52_p3 }
   0xf   :  { %62 = shalt.err (!%p59_p7)
}
  0x10   :  { %17 = dma.hbm_to_vmem [thread:$0]  %s125_s0, 128, %s15_s7, [#allocation3]  }
  0x11   :  { %85 = dma.done.wait [#allocation3], 128  }
  0x12   :  { %86 = vsyncadd [#allocation3], 4294967168  ;;  %s90_s18 = smov [#allocation5]   ;;  %v21_v0 = vld [vmem:[#allocation2] sm:$0xff] }
  0x13   :  { %s30_s19 = sshll.u32 %s90_s18, 4  ;;  %v22_v1 = vadd.f32 1.0, %v21_v0  ;;  %s31_s19 = int_to_ptr.vmem [resolvable:$true] %s30_s19 }
  0x14   :  { %s63_s20 = scalar_lea.vmem %s31_s19, 128  ;;  %p68_p9 = scmp.lt.s32.totalorder %s31_s19, %s31_s19 }
  0x15   :  { %23 = vst [vmem:[#allocation5] sm:$0xff] %v22_v1  ;;  %p64_p8 = scmp.ne.s32.totalorder %s31_s19, %s63_s20  ;;  %p69_p10 = scmp.lt.s32.totalorder %s63_s20, %s63_s20 }
  0x17   :  { %p70_p11 = por %p69_p10, %p68_p9 }
  0x19   :  { %p71_p12 = pnand %p70_p11, %p64_p8 }
  0x1b   :  { %74 = shalt.err (!%p71_p12)
}
  0x1c   :  { %s75_s23 = scalar_lea.hbm %s126_s1, 128 }
  0x1d   :  { %p76_p13 = scmp.ne.s32.totalorder %s126_s1, %s75_s23  ;;  %p79_p0 = scmp.lt.u32.totalorder %s75_s23, %s126_s1 }
  0x1f   :  { %p81_p1 = pnand %p79_p0, %p76_p13 }
  0x21   :  { %84 = shalt.err (!%p81_p1)
}
  0x22   :  { %33 = dma.vmem_to_hbm [thread:$0]  %s31_s19, 128, %s126_s1, [#allocation4]  }
  0x23   :  { %87 = dma.done.wait [#allocation4], 128  }
  0x24   :  { %88 = vsyncadd [#allocation4], 4294967168 }
  0x25   :  { %37 = vsyncpa [#allocation3], 1 }
  0x26   :  { %38 = vsyncpa [#allocation4], 1 }

// kernel: tpu_custom_call.1
= control target key start
LH: loop header
LB: loop body
LE: loop exit
PB: predicated region body
PF: predicated region fallthrough
CT: control target
= control target key end

     0   :  { %s1598_s0 = inlined_call_operand.hbm [shape: bf16[2,32,128], index: 0, kind: input, shape index: {}]   ;;  %s1599_s1 = inlined_call_operand.vmem [shape: f32[1,128], index: 1, kind: input, shape index: {}]   ;;  %s1600_s2 = inlined_call_operand.vmem [shape: f32[1,128], index: 2, kind: input, shape index: {}]   ;;  %s1601_s3 = inlined_call_operand.hbm [shape: bf16[128,128], index: 3, kind: input, shape index: {}]   ;;  %s1602_s4 = inlined_call_operand.hbm [shape: bf16[128,128], index: 4, kind: input, shape index: {}]   ;;  %s1603_s5 = inlined_call_operand.hbm [shape: bf16[2,32,128], index: 5, kind: output, shape index: {0}]   ;;  %s1604_s6 = inlined_call_operand.hbm [shape: bf16[2,32,128], index: 6, kind: output, shape index: {1}]  }
   0x1   :  { %1615 = sst [smem:[#allocation18_spill]] %s1601_s3 }
   0x2   :  { %1616 = sst [smem:[#allocation19_spill]] %s1602_s4 }
   0x3   :  { %1617 = sst [smem:[#allocation20_spill]] %s1604_s6 }
   0x4   :  { %12 = vsyncpa [#allocation3], 0 }
   0x5   :  { %14 = vsyncpa [#allocation3 + $0x1], 0 }
   0x6   :  { %15 = vsyncpa [#allocation6], 0 }
   0x7   :  { %16 = vsyncpa [#allocation4], 0 }
   0x8   :  { %18 = vsyncpa [#allocation4 + $0x1], 0 }
   0x9   :  { %19 = vsyncpa [#allocation10], 0 }
   0xa   :  { %21 = vsyncpa [#allocation10 + $0x1], 0  ;;  %s1269_s1 = smov 0   ;;  %s1271_s2 = smov 0  }
   0xb   :  { %s1273_s21 = smov 0   ;;  %s1275_s22 = smov 0  }
   0xc   :  { %s1277_s23 = smov 0   ;;  %s1279_s24 = smov 0  }
   0xd   :  { %s1281_s25 = smov 0   ;;  %s1283_s26 = smov 0  }
   0xe LB: > { %1618 = sst [smem:[#allocation15_spill]] %s1193_s1  ;;  %s755_s27 = sadd.s32 4294967295, %s1221_s26   ;;  %s1221_s26 = sphi %s1283_s26, %s27_s26   ;;  %s1217_s25 = sphi %s1281_s25, %s1649_s25   ;;  %s1213_s24 = sphi %s1279_s24, %s1648_s24   ;;  %s1209_s23 = sphi %s1277_s23, %s1647_s23   ;;  %s1205_s22 = sphi %s1275_s22, %s1646_s22   ;;  %s1201_s21 = sphi %s1273_s21, %s1645_s21   ;;  %s1197_s2 = sphi %s1271_s2, %s1644_s2   ;;  %s1193_s1 = sphi %s1269_s1, %s1643_s1  }
   0xf   : > { %s756_s28 = sadd.s32 4294967294, %s1221_s26   ;;  %p61_p0 = scmp.ne.s32.totalorder %s1197_s2, %s1193_s1 }
  0x10   : > { %p1313_p1 = scmp.eq.s32.totalorder %s755_s27, 0  ;;  %p1317_p2 = scmp.eq.s32.totalorder %s755_s27, 3 }
  0x11   : > { %p177_p3 = scmp.eq.s32.totalorder %s756_s28, 3  ;;  %p757_p5 = scmp.ge.s32.totalorder %s1221_s26, 1 }
  0x12   : > { %s1619_s29 = scalar_select %p1313_p1, 1, 0 }
  0x13   : > { %s1620_s30 = scalar_select %p1317_p2, 1, 0 }
  0x14   : > { %p1323_p4 = por %p1313_p1, %p61_p0  ;;  %p1328_p6 = por %p177_p3, %p61_p0 }
  0x15   : > { %p212_p7 = scmp.lt.s32.totalorder %s1221_s26, 5  ;;  %s1223_s10 = smov [#allocation5]  }
  0x16   : > { %s1621_s7 = scalar_select %p1323_p4, 1, 0 }
  0x17   : > { %s1622_s8 = scalar_select %p1328_p6, 1, 0 }
  0x18   : > { %p1333_p8 = pnand %p757_p5, %p212_p7  ;;  %s230_s11 = sshll.u32 %s1223_s10, 4  ;;  %s231_s11 = int_to_ptr.vmem [resolvable:$true] %s230_s11 }
  0x19   : > { %1623 = sst [smem:[#allocation16_spill]] %s1622_s8  ;;  %s1224_s13 = smov [#allocation7]  }
  0x1a   : > { %s1624_s9 = scalar_select %p1333_p8, 1, 0 }
  0x1b   : > { %p888_p9 = pneg %p1333_p8  ;;  %s243_s14 = sshll.u32 %s1224_s13, 4  ;;  %s1345_s14 = int_to_ptr.vmem [resolvable:$true] %s243_s14 }
  0x1c   : > { %s1626_s3 = sld [smem:[#allocation18_spill]] }
  0x1d   : > { %p1341_p10 = pnand %p888_p9, %p1313_p1 }
  0x1f   : > { %p1003_p12 = pneg %p1341_p10 }
  0x22   : > { %s1001_s17 = scalar_lea.hbm %s1626_s3, 1024 }
  0x23   : > { %p1002_p11 = scmp.ne.s32.totalorder %s1626_s3, %s1001_s17  ;;  %p1008_p3 = scmp.lt.u32.totalorder %s1001_s17, %s1626_s3 }
  0x25   : > { %p1004_p13 = pnand %p1003_p12, %p1002_p11 }
  0x27   : > { %p1005_p0 = pneg %p1004_p13 }
  0x29   : > { %p1010_p5 = pnand %p1008_p3, %p1005_p0 }
  0x2b   : > { %1013 = shalt.err (!%p1010_p5)
}
  0x2c   : > { %s1014_s28 = scalar_lea.vmem %s231_s11, 1024  ;;  %p1022_p1 = scmp.lt.s32.totalorder %s231_s11, %s231_s11 }
  0x2d   : > { %p1015_p7 = scmp.ne.s32.totalorder %s231_s11, %s1014_s28  ;;  %p1023_p4 = scmp.lt.s32.totalorder %s1014_s28, %s1014_s28 }
  0x2f   : > { %p1017_p9 = pnand %p1015_p7, %p1003_p12  ;;  %p1024_p8 = por %p1023_p4, %p1022_p1 }
  0x31   : > { %p1018_p6 = pneg %p1017_p9 }
  0x33   : > { %p1025_p2 = pnand %p1024_p8, %p1018_p6 }
  0x35   : > { %1028 = shalt.err (!%p1025_p2)
}
  0x36   : > { %s1610_s10 = smov 64   ;;  %s1611_s13 = smov 4  }
  0x37   : > { %891 = dma.hbm_to_vmem [thread:$0]  (!%p1341_p10), %s1626_s3, 1024, %s231_s11, [#allocation6], %s1610_s10, %s1610_s10, %s1611_s13  }
  0x38   : > { %s1627_s4 = sld [smem:[#allocation19_spill]] }
  0x3e   : > { %s1029_s19 = scalar_lea.hbm %s1627_s4, 1024 }
  0x3f   : > { %p1030_p1 = scmp.ne.s32.totalorder %s1627_s4, %s1029_s19  ;;  %p1036_p6 = scmp.lt.u32.totalorder %s1029_s19, %s1627_s4 }
  0x41   : > { %p1032_p2 = pnand %p1030_p1, %p1003_p12 }
  0x43   : > { %p1033_p4 = pneg %p1032_p2 }
  0x45   : > { %p1038_p8 = pnand %p1036_p6, %p1033_p4 }
  0x47   : > { %1041 = shalt.err (!%p1038_p8)
}
  0x48   : > { %s1042_s11 = scalar_lea.vmem %s1345_s14, 1024  ;;  %p1050_p3 = scmp.lt.s32.totalorder %s1345_s14, %s1345_s14 }
  0x49   : > { %p1043_p11 = scmp.ne.s32.totalorder %s1345_s14, %s1042_s11  ;;  %p1051_p5 = scmp.lt.s32.totalorder %s1042_s11, %s1042_s11 }
  0x4b   : > { %p1045_p13 = pnand %p1043_p11, %p1003_p12  ;;  %p1052_p7 = por %p1051_p5, %p1050_p3 }
  0x4d   : > { %p1046_p0 = pneg %p1045_p13 }
  0x4f   : > { %p1053_p9 = pnand %p1052_p7, %p1046_p0 }
  0x51   : > { %1056 = shalt.err (!%p1053_p9)
}
  0x52   : > { %894 = dma.hbm_to_vmem [thread:$0]  (!%p1341_p10), %s1627_s4, 1024, %s1345_s14, [#allocation6], %s1610_s10, %s1610_s10, %s1611_s13  }
  0x53   : > { %s36_s12 = sadd.s32 1, %s1213_s24  ;;  %s39_s16 = sadd.s32 1, %s1217_s25 }
  0x54   : > { %p37_p12 = scmp.ge.s32.totalorder %s36_s12, 2  ;;  %s48_s17 = sadd.s32 1, %s1201_s21 }
  0x55   : > { %p55_p1 = scmp.ne.s32.totalorder %s1201_s21, %s1197_s2  ;;  %p56_p2 = scmp.eq.s32.totalorder %s1221_s26, 0 }
  0x56   : > { %s1651_s12 = smov (%p37_p12, %s36_s12), 0  ;;  %s1653_s16 = smov (!%p37_p12, %s39_s16), %s1217_s25 }
  0x57   : > { %1628 = sst [smem:[#allocation17_spill]] %s1651_s12  ;;  %s44_s18 = ssub.s32 %s1213_s24, %s1651_s12 }
  0x58   : > { %p1411_p4 = por %p56_p2, %p55_p1  ;;  %p41_p10 = scmp.ge.s32.totalorder %s1653_s16, 2 }
  0x59   : > { %p1630_p6 = scmp.ne.s32.totalorder %s1620_s30, 0  ;;  %p908_p11 = scmp.lt.s32.totalorder %s1221_s26, 4 }
  0x5a   : > { %s257_s20 = sand.u32 1, %s1201_s21   ;;  %s1655_s16 = smov (%p41_p10, %s1653_s16), 0 }
  0x5b   : > { %p1417_p8 = por %p1630_p6, %p55_p1  ;;  %s761_s27 = sshll.u32 %s257_s20, 3 }
  0x5c   : > { %s43_s28 = ssub.s32 %s1217_s25, %s1655_s16  ;;  %s762_s8 = sshll.u32 %s1213_s24, 1 }
  0x5d   : > { %s45_s11 = sor.u32 %s44_s18, %s43_s28  ;;  %s763_s15 = sshll.u32 %s1217_s25, 2 }
  0x5e   : > { %p46_p13 = scmp.eq.s32.totalorder %s45_s11, 0  ;;  %s267_s10 = sadd.s32 %s763_s15, %s762_s8 }
  0x5f   : > { %s261_s13 = scalar_lea.vmem [#allocation2], %s761_s27  ;;  %s764_s4 = sshll.u32 %s267_s10, 6 }
  0x60   : > { %s270_s30 = sshll.u32 %s261_s13, 4  ;;  %s1437_s6 = scalar_lea.hbm %s1598_s0, %s764_s4  ;;  %s1432_s30 = int_to_ptr.vmem [resolvable:$true] %s270_s30 }
  0x61   : > { %s1430_s3 = scalar_select %p46_p13, %s1201_s21, %s48_s17  }
  0x62   : > { %p1443_p0 = pnand %p908_p11, %p1411_p4  ;;  %s1447_s10 = scalar_lea.sflag [#allocation3], %s257_s20 }
  0x63   : > { %s1057_s13 = scalar_lea.hbm %s1437_s6, 128  ;;  %s1062_s12 = scalar_lea.hbm %s1598_s0, 512 }
  0x64   : > { %p1058_p3 = scmp.ne.s32.totalorder %s1437_s6, %s1057_s13  ;;  %p1059_p5 = pneg %p1443_p0 }
  0x65   : > { %p1063_p12 = scmp.lt.u32.totalorder %s1437_s6, %s1598_s0  ;;  %p1064_p1 = scmp.lt.u32.totalorder %s1062_s12, %s1057_s13 }
  0x66   : > { %p1060_p7 = pnand %p1059_p5, %p1058_p3  ;;  %p1066_p4 = scmp.lt.u32.totalorder %s1057_s13, %s1437_s6 }
  0x67   : > { %p1065_p2 = por %p1064_p1, %p1063_p12 }
  0x68   : > { %p1061_p9 = pneg %p1060_p7 }
  0x69   : > { %p1067_p10 = por %p1066_p4, %p1065_p2 }
  0x6b   : > { %p1068_p6 = pnand %p1067_p10, %p1061_p9 }
  0x6d   : > { %1071 = shalt.err (!%p1068_p6)
}
  0x6e   : > { %s1072_s20 = scalar_lea.vmem %s1432_s30, 128  ;;  %s1227_s27 = smov [#allocation2]  }
  0x6f   : > { %p1073_p11 = scmp.ne.s32.totalorder %s1432_s30, %s1072_s20  ;;  %s1077_s28 = sshll.u32 %s1227_s27, 4  ;;  %s1078_s28 = int_to_ptr.vmem [resolvable:$false] %s1077_s28 }
  0x70   : > { %s1079_s11 = scalar_lea.vmem %s1078_s28, 256  ;;  %p1080_p7 = scmp.lt.s32.totalorder %s1432_s30, %s1078_s28 }
  0x71   : > { %p1075_p13 = pnand %p1073_p11, %p1059_p5  ;;  %p1081_p12 = scmp.lt.s32.totalorder %s1079_s11, %s1072_s20 }
  0x73   : > { %p1076_p3 = pneg %p1075_p13  ;;  %p1082_p1 = por %p1081_p12, %p1080_p7 }
  0x75   : > { %p1083_p2 = pnand %p1082_p1, %p1076_p3 }
  0x77   : > { %1086 = shalt.err (!%p1083_p2)
}
  0x78   : > { %s1633_s8 = smov 4   ;;  %s1634_s15 = smov 64  }
  0x79   : > { %898 = dma.hbm_to_vmem [thread:$0]  (!%p1443_p0), %s1437_s6, 128, %s1432_s30, %s1447_s10, %s1634_s15, %s1634_s15, %s1633_s8  }
  0x7a   : > { %p1635_p5 = scmp.ne.s32.totalorder %s1624_s9, 0 }
  0x7b   : > { %s1481_s13 = sand.u32 (!%p1635_p5), 1, %s1197_s2   ;;  %p1636_p9 = scmp.ne.s32.totalorder (!%p1635_p5), %s1621_s7, 0 }
  0x7c   : > { %282 = sbr.rel (%p1635_p5) target bundleno = 423 (0x1a7), region = 40  ;;  %s1484_s4 = sshll.u32 (!%p1635_p5), %s1481_s13, 3 }
  0x7d   : > { %s285_s18 = scalar_lea.sflag (!%p1635_p5), [#allocation3], %s1481_s13  ;;  %s288_s1 = scalar_lea.vmem (!%p1635_p5), [#allocation2], %s1484_s4 }
  0x83   : > { %1176 = dma.done.wait (%p1636_p9), %s285_s18, 128  }
  0x84   : > { %1178 = vsyncadd (%p1636_p9), %s285_s18, 4294967168  ;;  %p1637_p0 = scmp.ne.s32.totalorder %s1619_s29, 0 }
  0x86   : > { %1180 = dma.done.wait (%p1637_p0), [#allocation6], 2048  }
  0x87   : > { %1182 = vsyncadd (%p1637_p0), [#allocation6], 4294965248  ;;  %v1228_v0 = vmov 0.0   ;;  %vm1229_vm0 = vmmov 0   ;;  %v984_v1 = vld [vmem:[#allocation5] sm:$0xff]   ;;  %v986_v3 = vld [vmem:[#allocation5 + $0x8] sm:$0xff]  }
  0x88   : > { %834 = vmatprep.subr.bf16.mxu0 %v1228_v0  ;;  %854 = vmatprep.subr.bf16.mxu1 %v1228_v0  ;;  %v985_v2 = vld [vmem:[#allocation7] sm:$0xff]   ;;  %v987_v4 = vld [vmem:[#allocation7 + $0x8] sm:$0xff]   ;;  %v988_v5 = vld [vmem:[#allocation5 + $0x10] sm:$0xff]   ;;  %s794_s6 = sshll.u32 %s1205_s22, 1  ;;  %s795_s29 = sshll.u32 %s1209_s23, 2 }
  0x89   : > { %850 = vmatprep.mubr.msk.bf16.mxu0 %vm1229_vm0, %v1228_v0  ;;  %870 = vmatprep.mubr.msk.bf16.mxu1 %vm1229_vm0, %v1228_v0  ;;  %v989_v6 = vld [vmem:[#allocation7 + $0x10] sm:$0xff]   ;;  %v990_v7 = vld [vmem:[#allocation5 + $0x18] sm:$0xff]   ;;  %v992_v9 = vld [vmem:[#allocation5 + $0x20] sm:$0xff]   ;;  %s590_s7 = sadd.s32 %s795_s29, %s794_s6  ;;  %s322_s9 = scalar_lea.vmem [#allocation8], %s1484_s4 }
  0x8a   : > { %835 = vmatpush3.bf16.msra.mxu0 %v984_v1  ;;  %855 = vmatpush3.bf16.msra.mxu1 %v985_v2  ;;  %v991_v8 = vld [vmem:[#allocation7 + $0x18] sm:$0xff]   ;;  %v993_v10 = vld [vmem:[#allocation7 + $0x20] sm:$0xff]   ;;  %v994_v11 = vld [vmem:[#allocation5 + $0x28] sm:$0xff]   ;;  %s593_s30 = sshll.u32 %s322_s9, 4  ;;  %s329_s10 = scalar_lea.vmem [#allocation9], %s1484_s4  ;;  %s1502_s30 = int_to_ptr.vmem [resolvable:$true] %s593_s30 }
  0x8b   : > { %836 = vmatprep.subr.bf16.mxu0 %v1228_v0  ;;  %856 = vmatprep.subr.bf16.mxu1 %v1228_v0  ;;  %v995_v12 = vld [vmem:[#allocation7 + $0x28] sm:$0xff]   ;;  %v996_v13 = vld [vmem:[#allocation5 + $0x30] sm:$0xff]   ;;  %v998_v15 = vld [vmem:[#allocation5 + $0x38] sm:$0xff]   ;;  %s611_s12 = sshll.u32 %s329_s10, 4  ;;  %s796_s17 = sshll.u32 %s590_s7, 6  ;;  %s1504_s12 = int_to_ptr.vmem [resolvable:$true] %s611_s12 }
  0x8c   : > { %v997_v14 = vld [vmem:[#allocation7 + $0x30] sm:$0xff]   ;;  %v999_v16 = vld [vmem:[#allocation7 + $0x38] sm:$0xff]   ;;  %s1509_s19 = scalar_lea.hbm %s1603_s5, %s796_s17  ;;  %s1638_s28 = sld [smem:[#allocation20_spill]] }
  0x8d   : > { %v1000_v17 = vld [vmem:[%s288_s1] sm:$0xff]   ;;  %s573_s8 = scalar_lea.sflag [#allocation4], %s1481_s13  ;;  %s1087_s15 = scalar_lea.vmem %s1502_s30, 128 }
  0x8e   : > { %837 = vmatpush3.bf16.msra.mxu0 %v986_v3  ;;  %857 = vmatpush3.bf16.msra.mxu1 %v987_v4  ;;  %p1088_p4 = scmp.ne.s32.totalorder %s1502_s30, %s1087_s15  ;;  %s1230_s4 = smov [#allocation8]  }
  0x8f   : > { %838 = vmatprep.subr.bf16.mxu0 %v1228_v0  ;;  %858 = vmatprep.subr.bf16.mxu1 %v1228_v0  ;;  %s1091_s18 = sshll.u32 %s1230_s4, 4  ;;  %s1092_s18 = int_to_ptr.vmem [resolvable:$false] %s1091_s18 }
  0x90   : > { %p1089_p10 = pnand %p1088_p4, %p1417_p8  ;;  %s1093_s1 = scalar_lea.vmem %s1092_s18, 256 }
  0x91   : > { %p1094_p11 = scmp.lt.s32.totalorder %s1502_s30, %s1092_s18  ;;  %p1095_p13 = scmp.lt.s32.totalorder %s1093_s1, %s1087_s15 }
  0x92   : > { %839 = vmatpush3.bf16.msra.mxu0 %v988_v5  ;;  %859 = vmatpush3.bf16.msra.mxu1 %v989_v6  ;;  %s1514_s11 = scalar_lea.hbm %s1638_s28, %s796_s17  ;;  %p1090_p6 = pneg %p1089_p10 }
  0x93   : > { %840 = vmatprep.subr.bf16.mxu0 %v1228_v0  ;;  %860 = vmatprep.subr.bf16.mxu1 %v1228_v0  ;;  %p1096_p3 = por %p1095_p13, %p1094_p11 }
  0x95   : > { %p1097_p7 = pnand %p1096_p3, %p1090_p6 }
  0x96   : > { %841 = vmatpush3.bf16.msra.mxu0 %v990_v7  ;;  %861 = vmatpush3.bf16.msra.mxu1 %v991_v8 }
  0x97   : > { %842 = vmatprep.subr.bf16.mxu0 %v1228_v0  ;;  %862 = vmatprep.subr.bf16.mxu1 %v1228_v0 }
  0x9a   : > { %843 = vmatpush3.bf16.msra.mxu0 %v992_v9  ;;  %863 = vmatpush3.bf16.msra.mxu1 %v993_v10 }
  0x9b   : > { %844 = vmatprep.subr.bf16.mxu0 %v1228_v0  ;;  %864 = vmatprep.subr.bf16.mxu1 %v1228_v0 }
  0x9e   : > { %845 = vmatpush3.bf16.msra.mxu0 %v994_v11  ;;  %865 = vmatpush3.bf16.msra.mxu1 %v995_v12 }
  0x9f   : > { %846 = vmatprep.subr.bf16.mxu0 %v1228_v0  ;;  %866 = vmatprep.subr.bf16.mxu1 %v1228_v0 }
  0xa2   : > { %847 = vmatpush3.bf16.msra.mxu0 %v996_v13  ;;  %867 = vmatpush3.bf16.msra.mxu1 %v997_v14 }
  0xa3   : > { %848 = vmatprep.subr.bf16.mxu0 %v1228_v0  ;;  %868 = vmatprep.subr.bf16.mxu1 %v1228_v0 }
  0xa6   : > { %849 = vmatpush3.bf16.msra.mxu0 %v998_v15  ;;  %869 = vmatpush3.bf16.msra.mxu1 %v999_v16 }
  0xa9   : > { %851 = vmatmul.mubr.bf16.vlgmr.msra.gmra.mrb[0].mxu0 %v1000_v17  ;;  %871 = vmatmul.mubr.bf16.vlgmr.msra.gmra.mrb[0].mxu1 %v1000_v17 }
 0x17c   : > { %v440_v18 = vpop.f32.mrb[0].mxu0  ;;  %v555_v19 = vpop.f32.mrb[0].mxu1 }
 0x17d   : > { %v852_v20 = vpop.f32.mrb[1].mxu0  ;;  %v872_v21 = vpop.f32.mrb[1].mxu1 }
 0x17e   : > { %v443_v22 = vpop.f32.mrb[2].mxu0  ;;  %v558_v24 = vpop.f32.mrb[2].mxu1 }
 0x17f   : > { %v809_v23 = vpack.c.bf16 %v443_v22, %v440_v18  ;;  %v853_v25 = vpop.f32.mrb[3].mxu0  ;;  %v814_v26 = vpack.c.bf16 %v558_v24, %v555_v19  ;;  %v873_v27 = vpop.f32.mrb[3].mxu1 }
 0x181   : > { %810 = vst [vmem:[%s322_s9] sm:$0xff] %v809_v23   ;;  %815 = vst [vmem:[%s329_s10] sm:$0xff] %v814_v26  }
 0x182   : > { %1100 = shalt.err (!%p1097_p7)
}
 0x183   : > { %s1101_s6 = scalar_lea.hbm %s1509_s19, 128  ;;  %s1105_s9 = scalar_lea.hbm %s1603_s5, 512 }
 0x184   : > { %p1102_p12 = scmp.ne.s32.totalorder %s1509_s19, %s1101_s6  ;;  %p1106_p5 = scmp.lt.u32.totalorder %s1509_s19, %s1603_s5 }
 0x185   : > { %p1107_p9 = scmp.lt.u32.totalorder %s1105_s9, %s1101_s6  ;;  %p1109_p4 = scmp.lt.u32.totalorder %s1101_s6, %s1509_s19 }
 0x186   : > { %p1103_p1 = pnand %p1102_p12, %p1417_p8 }
 0x187   : > { %p1108_p0 = por %p1107_p9, %p1106_p5 }
 0x188   : > { %p1104_p2 = pneg %p1103_p1 }
 0x189   : > { %p1110_p10 = por %p1109_p4, %p1108_p0 }
 0x18b   : > { %p1111_p6 = pnand %p1110_p10, %p1104_p2 }
 0x18d   : > { %1114 = shalt.err (!%p1111_p6)
}
 0x18e   : > { %s1231_s22 = smov 64   ;;  %s1232_s23 = smov 4  }
 0x18f   : > { %884 = dma.vmem_to_hbm [thread:$0]  (%p1417_p8), %s1502_s30, 128, %s1509_s19, %s573_s8, %s1231_s22, %s1231_s22, %s1232_s23  }
 0x190   : > { %s578_s20 = scalar_lea.sflag [#allocation10], %s1481_s13  ;;  %s1115_s27 = scalar_lea.vmem %s1504_s12, 128 }
 0x191   : > { %p1116_p11 = scmp.ne.s32.totalorder %s1504_s12, %s1115_s27  ;;  %s1233_s15 = smov [#allocation9]  }
 0x192   : > { %s1119_s4 = sshll.u32 %s1233_s15, 4  ;;  %s1120_s4 = int_to_ptr.vmem [resolvable:$false] %s1119_s4 }
 0x193   : > { %p1117_p13 = pnand %p1116_p11, %p1417_p8  ;;  %s1121_s18 = scalar_lea.vmem %s1120_s4, 256 }
 0x194   : > { %p1122_p7 = scmp.lt.s32.totalorder %s1504_s12, %s1120_s4  ;;  %p1123_p12 = scmp.lt.s32.totalorder %s1121_s18, %s1115_s27 }
 0x195   : > { %p1118_p3 = pneg %p1117_p13 }
 0x196   : > { %p1124_p1 = por %p1123_p12, %p1122_p7 }
 0x198   : > { %p1125_p2 = pnand %p1124_p1, %p1118_p3 }
 0x19a   : > { %1128 = shalt.err (!%p1125_p2)
}
 0x19b   : > { %s1129_s30 = scalar_lea.hbm %s1514_s11, 128  ;;  %s1133_s1 = scalar_lea.hbm %s1638_s28, 512 }
 0x19c   : > { %p1130_p5 = scmp.ne.s32.totalorder %s1514_s11, %s1129_s30  ;;  %p1134_p4 = scmp.lt.u32.totalorder %s1514_s11, %s1638_s28 }
 0x19d   : > { %p1135_p10 = scmp.lt.u32.totalorder %s1133_s1, %s1129_s30  ;;  %p1137_p11 = scmp.lt.u32.totalorder %s1129_s30, %s1514_s11 }
 0x19e   : > { %p1131_p9 = pnand %p1130_p5, %p1417_p8 }
 0x19f   : > { %p1136_p6 = por %p1135_p10, %p1134_p4 }
 0x1a0   : > { %p1132_p0 = pneg %p1131_p9 }
 0x1a1   : > { %p1138_p13 = por %p1137_p11, %p1136_p6 }
 0x1a3   : > { %p1139_p3 = pnand %p1138_p13, %p1132_p0 }
 0x1a5   : > { %1142 = shalt.err (!%p1139_p3)
}
 0x1a6   : > { %885 = dma.vmem_to_hbm [thread:$0]  (%p1417_p8), %s1504_s12, 128, %s1514_s11, %s578_s20, %s1231_s22, %s1231_s22, %s1232_s23  }
 0x1a7 PF: > { %s1639_s7 = sld [smem:[#allocation15_spill]]  ;;  %s1640_s9 = sld [smem:[#allocation16_spill]] }
 0x1a8   : > { %p911_p7 = scmp.ge.s32.totalorder %s1221_s26, 2 }
 0x1ad   : > { %s626_s10 = sand.u32 1, %s1639_s7   ;;  %p1641_p12 = scmp.ne.s32.totalorder %s1640_s9, 0 }
 0x1ae   : > { %s627_s17 = scalar_lea.sflag [#allocation4], %s626_s10 }
 0x1af   : > { %p900_p1 = pnand %p911_p7, %p1641_p12 }
 0x1b1   : > { %1184 = dma.done.wait (!%p900_p1), %s627_s17, 128  }
 0x1b2   : > { %1186 = vsyncadd (!%p900_p1), %s627_s17, 4294967168  ;;  %s636_s14 = scalar_lea.sflag [#allocation10], %s626_s10 }
 0x1b3   : > { %1188 = dma.done.wait (!%p900_p1), %s636_s14, 128  }
 0x1b4   : > { %1190 = vsyncadd (!%p900_p1), %s636_s14, 4294967168  ;;  %s27_s26 = sadd.s32 1, %s1221_s26   ;;  %s1642_s13 = sld [smem:[#allocation17_spill]] }
 0x1b5   : > { %p24_p2 = scmp.ge.s32.totalorder %s27_s26, 6   ;;  %s1643_s1 = smov %s1197_s2 }
 0x1b6   : > { %s1644_s2 = smov %s1201_s21  ;;  %s1645_s21 = smov %s1430_s3 }
 0x1b7   : > { %s1646_s22 = smov %s1213_s24  ;;  %s1647_s23 = smov %s1217_s25 }
 0x1b8   : > { %s1649_s25 = smov %s1655_s16  ;;  %26 = sbr.rel (!%p24_p2) target bundleno = 14 (0xe), region = 110 }
 0x1ba   : > { %s1648_s24 = smov %s1642_s13 }
 0x1bf   :  { %641 = vsyncpa [#allocation3], 1 }
 0x1c0   :  { %643 = vsyncpa [#allocation3 + $0x1], 1 }
 0x1c1   :  { %644 = vsyncpa [#allocation6], 1 }
 0x1c2   :  { %645 = vsyncpa [#allocation4], 1 }
 0x1c3   :  { %647 = vsyncpa [#allocation4 + $0x1], 1 }
 0x1c4   :  { %648 = vsyncpa [#allocation10], 1 }
 0x1c5   :  { %650 = vsyncpa [#allocation10 + $0x1], 1 }

</bundles_post_ra>
